<compile_context>
chip_gen: v6e
topology: v6e:2x2x1
jax: 0.10.0
libtpu: 0.0.40
codegen_flags: <defaults>
</compile_context>

<pallas_src>
import functools

import jax
import jax.numpy as jnp
from jax.experimental import pallas as pl
from jax.experimental.pallas import tpu as pltpu

_SQRT_HALF = 0.7071067811865476


def _mlp_kernel(x_ref, w1_ref, b1_ref, w2_ref, b2_ref, o_ref):
    # One fused grid step per (tm, D) row block:
    #   h = x @ W1 + b1   (MXU, bf16 operands, f32 accumulation)
    #   g = gelu(h)       (exact erf GELU, f32 — matches PyTorch F.gelu)
    #   y = g @ W2 + b2   (MXU, bf16 operands, f32 accumulation)
    # Dropout(p=0.0) is the identity and is elided.
    x = x_ref[...].astype(jnp.bfloat16)          # f32 tile DMA'd, cast on VPU
    h = jnp.dot(x, w1_ref[...], preferred_element_type=jnp.float32)
    h = h + b1_ref[...]                          # (tm, H) f32
    g = 0.5 * h * (1.0 + jax.lax.erf(h * jnp.float32(_SQRT_HALF)))
    # TODO(synk): for production hidden sizes (H >= 3072) chunk the H axis here
    # (accumulate g_k @ W2[k] into an f32 scratch) to cap the (tm, H) live
    # intermediate; unnecessary at this config's H=512.
    y = jnp.dot(g.astype(jnp.bfloat16), w2_ref[...],
                preferred_element_type=jnp.float32)
    o_ref[...] = (y + b2_ref[...]).astype(o_ref.dtype)


def _round_up(n, m):
    return ((n + m - 1) // m) * m


def _cdiv(a, b):
    return -(-a // b)


def _default_vmem_limit_bytes():
    # v5e / v6e have 128 MiB physical VMEM -> generous 96 MiB scoped limit.
    # Anything else (incl. v7x's 64 MiB per TensorCore) gets a safe 48 MiB cap.
    try:
        kind = jax.devices()[0].device_kind.lower()
    except Exception:
        kind = ""
    if "v5" in kind or "v6" in kind:
        return 96 * 1024 * 1024
    return 48 * 1024 * 1024


@functools.partial(jax.jit, static_argnames=("tm", "out_dtype"))
def mlp_forward(x, w1, b1, w2, b2, *, tm=512, out_dtype=None):
    """ViT MLP forward. x: (B, S, D); w1:(D,H), b1:(1,H), w2:(H,D), b2:(1,D)."""
    B, S, D = x.shape
    H = w1.shape[1]
    M = B * S
    out_dtype = x.dtype if out_dtype is None else out_dtype

    # Row tile: multiple of 16 (dense bf16 sublane packing); multiples of 128
    # give full-occupancy MXU passes.  Shrink for tiny M so we don't DMA
    # mostly-padding blocks; if one tile would swallow all rows but there is
    # enough work for two, split it so the parallel grid has >= 2 steps and
    # both v7x TensorCores are used.
    tm_eff = min(tm, _round_up(M, 16))
    if M >= 2 * 128 and _cdiv(M, tm_eff) < 2:
        tm_eff = max(128, _round_up(_cdiv(M, 2), 128))
    grid_m = _cdiv(M, tm_eff)            # ragged tail block is masked by Pallas

    x2 = x.reshape(M, D)                 # contiguous view; bf16 cast is in-kernel
    w1b = w1.astype(jnp.bfloat16)
    w2b = w2.astype(jnp.bfloat16)

    resident = pl.Buffered(1)            # constant index map -> never re-DMA'd;
                                         # single buffer halves resident VMEM.

    out = pl.pallas_call(
        _mlp_kernel,
        out_shape=jax.ShapeDtypeStruct((M, D), out_dtype),
        grid_spec=pltpu.PrefetchScalarGridSpec(
            num_scalar_prefetch=0,
            grid=(grid_m,),
            in_specs=[
                pl.BlockSpec((tm_eff, D), lambda i: (i, 0)),              # x (f32)
                pl.BlockSpec((D, H), lambda i: (0, 0), pipeline_mode=resident),  # W1 bf16
                pl.BlockSpec((1, H), lambda i: (0, 0), pipeline_mode=resident),  # b1 f32
                pl.BlockSpec((H, D), lambda i: (0, 0), pipeline_mode=resident),  # W2 bf16
                pl.BlockSpec((1, D), lambda i: (0, 0), pipeline_mode=resident),  # b2 f32
            ],
            out_specs=pl.BlockSpec((tm_eff, D), lambda i: (i, 0)),
        ),
        compiler_params=pltpu.CompilerParams(
            # Independent row axis -> megacore shards the grid across TCs on v7x.
            dimension_semantics=("parallel",),
            vmem_limit_bytes=_default_vmem_limit_bytes(),
        ),
    )(x2, w1b, b1, w2b, b2)

    return out.reshape(B, S, D)


def _init_linear(key, fan_in, fan_out):
    # Deterministic init mimicking nn.Linear: U(-1/sqrt(fan_in), 1/sqrt(fan_in)).
    kw, kb = jax.random.split(key)
    bound = 1.0 / jnp.sqrt(fan_in)
    w = jax.random.uniform(kw, (fan_in, fan_out), jnp.float32, -bound, bound)
    b = jax.random.uniform(kb, (1, fan_out), jnp.float32, -bound, bound)
    return w, b


if __name__ == "__main__":
    embed_dim = 256       # ViTConfig.embed_dim
    hidden_dim = 512      # ViTConfig.mlp_hidden_dim = 256 * 2
    B, S = 2, 8           # small batch / sequence for the self-test

    key = jax.random.PRNGKey(0)
    kx, k1, k2 = jax.random.split(key, 3)

    x = jax.random.normal(kx, (B, S, embed_dim), jnp.float32)
    w1, b1 = _init_linear(k1, embed_dim, hidden_dim)
    w2, b2 = _init_linear(k2, hidden_dim, embed_dim)

    y = mlp_forward(x, w1, b1, w2, b2)
    y = jax.block_until_ready(y)

    # Reference 1: same bf16-operand / f32-accumulate numerics as the kernel.
    xb = x.reshape(-1, embed_dim).astype(jnp.bfloat16)
    h_ref = jnp.dot(xb, w1.astype(jnp.bfloat16),
                    preferred_element_type=jnp.float32) + b1[0]
    g_ref = 0.5 * h_ref * (1.0 + jax.lax.erf(h_ref / jnp.sqrt(2.0)))
    y_ref = (jnp.dot(g_ref.astype(jnp.bfloat16), w2.astype(jnp.bfloat16),
                     preferred_element_type=jnp.float32)
             + b2[0]).reshape(B, S, embed_dim)
    assert jnp.allclose(y, y_ref, atol=2e-3, rtol=2e-3), "mismatch vs bf16 reference"

    # Reference 2: pure f32 path — confirm the bf16 operand cast only perturbs
    # results at the expected (small) level, i.e. semantics are preserved.
    h32 = x.reshape(-1, embed_dim) @ w1 + b1[0]
    g32 = 0.5 * h32 * (1.0 + jax.lax.erf(h32 / jnp.sqrt(2.0)))
    y32 = (g32 @ w2 + b2[0]).reshape(B, S, embed_dim)
    assert jnp.allclose(y, y32, atol=5e-2, rtol=5e-2), "drifted from f32 semantics"

    print("KERNEL_OK")
</pallas_src>

<mosaic_0001>
module attributes {stable_mosaic.version = 11 : i64} {
  func.func @_mlp_kernel(%arg0: i32, %arg1: memref<16x256xf32, #tpu.memory_space<vmem>>, %arg2: memref<256x512xbf16, #tpu.memory_space<vmem>>, %arg3: memref<1x512xf32, #tpu.memory_space<vmem>>, %arg4: memref<512x256xbf16, #tpu.memory_space<vmem>>, %arg5: memref<1x256xf32, #tpu.memory_space<vmem>>, %arg6: memref<16x256xf32, #tpu.memory_space<vmem>>) attributes {dimension_semantics = [#tpu.dimension_semantics<parallel>], iteration_bounds = array<i64: 1>, scalar_prefetch = 0 : i64, scratch_operands = 0 : i64, tpu.core_type = #tpu.core_type<tc>, window_params = [{transform_indices = @transform_0, window_bounds = array<i64: 16, 256>}, {pipeline_mode = #tpu.pipeline_mode<synchronous>, transform_indices = @transform_1, window_bounds = array<i64: 256, 512>}, {pipeline_mode = #tpu.pipeline_mode<synchronous>, transform_indices = @transform_2, window_bounds = array<i64: 1, 512>}, {pipeline_mode = #tpu.pipeline_mode<synchronous>, transform_indices = @transform_3, window_bounds = array<i64: 512, 256>}, {pipeline_mode = #tpu.pipeline_mode<synchronous>, transform_indices = @transform_4, window_bounds = array<i64: 1, 256>}, {transform_indices = @transform_5, window_bounds = array<i64: 16, 256>}]} {
    %c0 = arith.constant 0 : index
    %c0_0 = arith.constant 0 : index
    %0 = vector.load %arg1[%c0, %c0_0] : memref<16x256xf32, #tpu.memory_space<vmem>>, vector<16x256xf32>
    %1 = arith.truncf %0 : vector<16x256xf32> to vector<16x256xbf16>
    %c0_1 = arith.constant 0 : index
    %c0_2 = arith.constant 0 : index
    %2 = vector.load %arg2[%c0_1, %c0_2] : memref<256x512xbf16, #tpu.memory_space<vmem>>, vector<256x512xbf16>
    %cst = arith.constant dense<0.000000e+00> : vector<16x512xf32>
    %3 = tpu.matmul %1, %2, %cst {dimension_numbers = #tpu.dot_dimension_numbers<[1], [0], [0], [1], [0, 0, 1, 1], [], []>} : vector<16x256xbf16>, vector<256x512xbf16>, vector<16x512xf32> -> vector<16x512xf32>
    %c0_3 = arith.constant 0 : index
    %c0_4 = arith.constant 0 : index
    %4 = vector.load %arg3[%c0_3, %c0_4] : memref<1x512xf32, #tpu.memory_space<vmem>>, vector<1x512xf32>
    %5 = vector.broadcast %4 : vector<1x512xf32> to vector<16x512xf32>
    %6 = arith.addf %3, %5 : vector<16x512xf32>
    %cst_5 = arith.constant 5.000000e-01 : f32
    %7 = vector.broadcast %cst_5 : f32 to vector<16x512xf32>
    %8 = arith.mulf %7, %6 : vector<16x512xf32>
    %cst_6 = arith.constant 0.707106769 : f32
    %9 = vector.broadcast %cst_6 : f32 to vector<16x512xf32>
    %10 = arith.mulf %6, %9 : vector<16x512xf32>
    %11 = math.erf %10 : vector<16x512xf32>
    %cst_7 = arith.constant 1.000000e+00 : f32
    %12 = vector.broadcast %cst_7 : f32 to vector<16x512xf32>
    %13 = arith.addf %12, %11 : vector<16x512xf32>
    %14 = arith.mulf %8, %13 : vector<16x512xf32>
    %15 = arith.truncf %14 : vector<16x512xf32> to vector<16x512xbf16>
    %c0_8 = arith.constant 0 : index
    %c0_9 = arith.constant 0 : index
    %16 = vector.load %arg4[%c0_8, %c0_9] : memref<512x256xbf16, #tpu.memory_space<vmem>>, vector<512x256xbf16>
    %cst_10 = arith.constant dense<0.000000e+00> : vector<16x256xf32>
    %17 = tpu.matmul %15, %16, %cst_10 {dimension_numbers = #tpu.dot_dimension_numbers<[1], [0], [0], [1], [0, 0, 1, 1], [], []>} : vector<16x512xbf16>, vector<512x256xbf16>, vector<16x256xf32> -> vector<16x256xf32>
    %c0_11 = arith.constant 0 : index
    %c0_12 = arith.constant 0 : index
    %18 = vector.load %arg5[%c0_11, %c0_12] : memref<1x256xf32, #tpu.memory_space<vmem>>, vector<1x256xf32>
    %19 = vector.broadcast %18 : vector<1x256xf32> to vector<16x256xf32>
    %20 = arith.addf %17, %19 : vector<16x256xf32>
    %c0_13 = arith.constant 0 : index
    %c0_14 = arith.constant 0 : index
    %21 = vector.load %arg6[%c0_13, %c0_14] : memref<16x256xf32, #tpu.memory_space<vmem>>, vector<16x256xf32>
    tpu.vector_store %arg6[%c0_13, %c0_14], %20 {strides = array<i32>} : memref<16x256xf32, #tpu.memory_space<vmem>>, vector<16x256xf32>,
    return
  }
  func.func @transform_0(%arg0: i32) -> (i32, i32) {
    %c0_i32 = arith.constant 0 : i32
    %c0_i32_0 = arith.constant 0 : i32
    return %arg0, %c0_i32 : i32, i32
  }
  func.func @transform_1(%arg0: i32) -> (i32, i32) {
    %c0_i32 = arith.constant 0 : i32
    %c0_i32_0 = arith.constant 0 : i32
    %c0_i32_1 = arith.constant 0 : i32
    return %c0_i32, %c0_i32_0 : i32, i32
  }
  func.func @transform_2(%arg0: i32) -> (i32, i32) {
    %c0_i32 = arith.constant 0 : i32
    %c0_i32_0 = arith.constant 0 : i32
    %c0_i32_1 = arith.constant 0 : i32
    return %c0_i32, %c0_i32_0 : i32, i32
  }
  func.func @transform_3(%arg0: i32) -> (i32, i32) {
    %c0_i32 = arith.constant 0 : i32
    %c0_i32_0 = arith.constant 0 : i32
    %c0_i32_1 = arith.constant 0 : i32
    return %c0_i32, %c0_i32_0 : i32, i32
  }
  func.func @transform_4(%arg0: i32) -> (i32, i32) {
    %c0_i32 = arith.constant 0 : i32
    %c0_i32_0 = arith.constant 0 : i32
    %c0_i32_1 = arith.constant 0 : i32
    return %c0_i32, %c0_i32_0 : i32, i32
  }
  func.func @transform_5(%arg0: i32) -> (i32, i32) {
    %c0_i32 = arith.constant 0 : i32
    %c0_i32_0 = arith.constant 0 : i32
    return %arg0, %c0_i32 : i32, i32
  }
}

</mosaic_0001>

<bundles_post_ra>
// kernel: mlp_forward.1
= control target key start
LH: loop header
LB: loop body
LE: loop exit
PB: predicated region body
PF: predicated region fallthrough
CT: control target
= control target key end

     0   :  { %s1878_s0 = inlined_call_operand.vmem [shape: f32[16,256], index: 0, kind: input, shape index: {}]   ;;  %s1879_s1 = inlined_call_operand.vmem [shape: bf16[256,512], index: 1, kind: input, shape index: {}]   ;;  %s1880_s2 = inlined_call_operand.vmem [shape: f32[1,512], index: 2, kind: input, shape index: {}]   ;;  %s1881_s3 = inlined_call_operand.vmem [shape: bf16[512,256], index: 3, kind: input, shape index: {}]   ;;  %s1882_s4 = inlined_call_operand.vmem [shape: f32[1,256], index: 4, kind: input, shape index: {}]   ;;  %s1883_s5 = inlined_call_operand.hbm [shape: f32[16,256], index: 5, kind: output, shape index: {}]  }
   0x1   :  { %v1196_v0 = vld [vmem:[%s1879_s1 + $0xe4] ss:$16 sps:$4 sm:$0xff]   ;;  %v1198_v1 = vld [vmem:[%s1879_s1 + $0xec] ss:$16 sps:$4 sm:$0xff]   ;;  %v1200_v2 = vld [vmem:[%s1879_s1 + $0xe0] ss:$16 sps:$4 sm:$0xff]  }
   0x2   :  { %433 = vmatprep.subr.bf16.mxu0 %v1196_v0  ;;  %v1201_v3 = vld [vmem:[%s1879_s1 + $0xe8] ss:$16 sps:$4 sm:$0xff]   ;;  %476 = vmatprep.subr.bf16.mxu1 %v1198_v1  ;;  %v1202_v4 = vld [vmem:[%s1879_s1 + $0xc4] ss:$16 sps:$4 sm:$0xff]   ;;  %v1204_v5 = vld [vmem:[%s1879_s1 + $0xcc] ss:$16 sps:$4 sm:$0xff]  }
   0x3   :  { %434 = vmatpush1.bf16.msra.mxu0 %v1200_v2  ;;  %477 = vmatpush1.bf16.msra.mxu1 %v1201_v3  ;;  %v1206_v6 = vld [vmem:[%s1879_s1 + $0xc0] ss:$16 sps:$4 sm:$0xff]   ;;  %v1207_v7 = vld [vmem:[%s1879_s1 + $0xc8] ss:$16 sps:$4 sm:$0xff]   ;;  %v1208_v8 = vld [vmem:[%s1879_s1 + $0xa4] ss:$16 sps:$4 sm:$0xff]  }
   0x4   :  { %435 = vmatprep.subr.bf16.mxu0 %v1202_v4  ;;  %478 = vmatprep.subr.bf16.mxu1 %v1204_v5  ;;  %v1210_v9 = vld [vmem:[%s1879_s1 + $0xac] ss:$16 sps:$4 sm:$0xff]   ;;  %v1212_v10 = vld [vmem:[%s1879_s1 + $0xa0] ss:$16 sps:$4 sm:$0xff]   ;;  %v1213_v11 = vld [vmem:[%s1879_s1 + $0xa8] ss:$16 sps:$4 sm:$0xff]  }
   0x5   :  { %v1214_v12 = vld [vmem:[%s1879_s1 + $0x84] ss:$16 sps:$4 sm:$0xff]   ;;  %v1216_v13 = vld [vmem:[%s1879_s1 + $0x8c] ss:$16 sps:$4 sm:$0xff]   ;;  %v1218_v14 = vld [vmem:[%s1879_s1 + $0x80] ss:$16 sps:$4 sm:$0xff]  }
   0x6   :  { %v1219_v15 = vld [vmem:[%s1879_s1 + $0x88] ss:$16 sps:$4 sm:$0xff]   ;;  %v1220_v16 = vld [vmem:[%s1879_s1 + $0x64] ss:$16 sps:$4 sm:$0xff]   ;;  %v1222_v17 = vld [vmem:[%s1879_s1 + $0x6c] ss:$16 sps:$4 sm:$0xff]  }
   0x7   :  { %436 = vmatpush1.bf16.msra.mxu0 %v1206_v6  ;;  %479 = vmatpush1.bf16.msra.mxu1 %v1207_v7  ;;  %v1224_v18 = vld [vmem:[%s1879_s1 + $0x60] ss:$16 sps:$4 sm:$0xff]   ;;  %v1225_v19 = vld [vmem:[%s1879_s1 + $0x68] ss:$16 sps:$4 sm:$0xff]   ;;  %v1226_v20 = vld [vmem:[%s1879_s1 + $0x44] ss:$16 sps:$4 sm:$0xff]  }
   0x8   :  { %437 = vmatprep.subr.bf16.mxu0 %v1208_v8  ;;  %480 = vmatprep.subr.bf16.mxu1 %v1210_v9  ;;  %v1228_v21 = vld [vmem:[%s1879_s1 + $0x4c] ss:$16 sps:$4 sm:$0xff]   ;;  %v1230_v22 = vld [vmem:[%s1879_s1 + $0x40] ss:$16 sps:$4 sm:$0xff]   ;;  %v1231_v23 = vld [vmem:[%s1879_s1 + $0x48] ss:$16 sps:$4 sm:$0xff]  }
   0x9   :  { %v1232_v24 = vld [vmem:[%s1879_s1 + $0x24] ss:$16 sps:$4 sm:$0xff]   ;;  %v1234_v25 = vld [vmem:[%s1879_s1 + $0x2c] ss:$16 sps:$4 sm:$0xff]   ;;  %v1236_v26 = vld [vmem:[%s1879_s1 + $0x20] ss:$16 sps:$4 sm:$0xff]  }
   0xa   :  { %v1237_v27 = vld [vmem:[%s1879_s1 + $0x28] ss:$16 sps:$4 sm:$0xff]   ;;  %v1238_v28 = vld [vmem:[%s1879_s1 + $0x4] ss:$16 sps:$4 sm:$0xff]   ;;  %v1240_v29 = vld [vmem:[%s1879_s1 + $0xc] ss:$16 sps:$4 sm:$0xff]  }
   0xb   :  { %438 = vmatpush1.bf16.msra.mxu0 %v1212_v10  ;;  %481 = vmatpush1.bf16.msra.mxu1 %v1213_v11  ;;  %v1242_v30 = vld [vmem:[%s1879_s1] ss:$16 sps:$4 sm:$0xff]   ;;  %v1243_v31 = vld [vmem:[%s1879_s1 + $0x8] ss:$16 sps:$4 sm:$0xff]   ;;  %v1244_v32 = vld [vmem:[%s1879_s1 + $0x1e4] ss:$16 sps:$4 sm:$0xff]  }
   0xc   :  { %439 = vmatprep.subr.bf16.mxu0 %v1214_v12  ;;  %482 = vmatprep.subr.bf16.mxu1 %v1216_v13  ;;  %v1246_v33 = vld [vmem:[%s1879_s1 + $0x1ec] ss:$16 sps:$4 sm:$0xff]   ;;  %v1248_v34 = vld [vmem:[%s1879_s1 + $0x1e0] ss:$16 sps:$4 sm:$0xff]   ;;  %v1249_v35 = vld [vmem:[%s1879_s1 + $0x1e8] ss:$16 sps:$4 sm:$0xff]  }
   0xd   :  { %v1250_v36 = vld [vmem:[%s1879_s1 + $0x1c4] ss:$16 sps:$4 sm:$0xff]   ;;  %v1252_v37 = vld [vmem:[%s1879_s1 + $0x1cc] ss:$16 sps:$4 sm:$0xff]   ;;  %v1254_v38 = vld [vmem:[%s1879_s1 + $0x1c0] ss:$16 sps:$4 sm:$0xff]  }
   0xe   :  { %v1255_v39 = vld [vmem:[%s1879_s1 + $0x1c8] ss:$16 sps:$4 sm:$0xff]   ;;  %v1256_v40 = vld [vmem:[%s1879_s1 + $0x1a4] ss:$16 sps:$4 sm:$0xff]   ;;  %v1258_v41 = vld [vmem:[%s1879_s1 + $0x1ac] ss:$16 sps:$4 sm:$0xff]  }
   0xf   :  { %440 = vmatpush1.bf16.msra.mxu0 %v1218_v14  ;;  %483 = vmatpush1.bf16.msra.mxu1 %v1219_v15  ;;  %v1260_v42 = vld [vmem:[%s1879_s1 + $0x1a0] ss:$16 sps:$4 sm:$0xff]   ;;  %v1261_v43 = vld [vmem:[%s1879_s1 + $0x1a8] ss:$16 sps:$4 sm:$0xff]   ;;  %v1262_v44 = vld [vmem:[%s1879_s1 + $0x184] ss:$16 sps:$4 sm:$0xff]  }
  0x10   :  { %441 = vmatprep.subr.bf16.mxu0 %v1220_v16  ;;  %484 = vmatprep.subr.bf16.mxu1 %v1222_v17  ;;  %v1264_v45 = vld [vmem:[%s1879_s1 + $0x18c] ss:$16 sps:$4 sm:$0xff]   ;;  %v1266_v47 = vld [vmem:[%s1879_s1 + $0x180] ss:$16 sps:$4 sm:$0xff]   ;;  %v1267_v48 = vld [vmem:[%s1879_s1 + $0x188] ss:$16 sps:$4 sm:$0xff]  }
  0x11   :  { %v22_v46 = vld [vmem:[%s1878_s0 + $0x8] sm:$0xff]  ;;  %v24_v49 = vld [vmem:[%s1878_s0 + $0x18] sm:$0xff]  ;;  %v1268_v50 = vld [vmem:[%s1879_s1 + $0x164] ss:$16 sps:$4 sm:$0xff]  }
  0x12   :  { %v26_v51 = vpack.c.bf16 %v24_v49, %v22_v46  ;;  %v1270_v52 = vld [vmem:[%s1879_s1 + $0x16c] ss:$16 sps:$4 sm:$0xff]   ;;  %v1272_v53 = vld [vmem:[%s1879_s1 + $0x160] ss:$16 sps:$4 sm:$0xff]   ;;  %v1273_v54 = vld [vmem:[%s1879_s1 + $0x168] ss:$16 sps:$4 sm:$0xff]  }
  0x13   :  { %442 = vmatpush1.bf16.msra.mxu0 %v1224_v18  ;;  %485 = vmatpush1.bf16.msra.mxu1 %v1225_v19  ;;  %v1274_v55 = vld [vmem:[%s1879_s1 + $0x144] ss:$16 sps:$4 sm:$0xff]   ;;  %v1276_v56 = vld [vmem:[%s1879_s1 + $0x14c] ss:$16 sps:$4 sm:$0xff]   ;;  %v1278_v57 = vld [vmem:[%s1879_s1 + $0x140] ss:$16 sps:$4 sm:$0xff]  }
  0x14   :  { %443 = vmatprep.subr.bf16.mxu0 %v1226_v20  ;;  %486 = vmatprep.subr.bf16.mxu1 %v1228_v21  ;;  %v1279_v58 = vld [vmem:[%s1879_s1 + $0x148] ss:$16 sps:$4 sm:$0xff]   ;;  %v1280_v59 = vld [vmem:[%s1879_s1 + $0x124] ss:$16 sps:$4 sm:$0xff]   ;;  %v1282_v60 = vld [vmem:[%s1879_s1 + $0x12c] ss:$16 sps:$4 sm:$0xff]  }
  0x15   :  { %465 = vmatprep.mubr.bf16.mxu0 %v26_v51  ;;  %508 = vmatprep.mubr.bf16.mxu1 %v26_v51  ;;  %v1284_v61 = vld [vmem:[%s1879_s1 + $0x120] ss:$16 sps:$4 sm:$0xff]   ;;  %v1285_v62 = vld [vmem:[%s1879_s1 + $0x128] ss:$16 sps:$4 sm:$0xff]   ;;  %v1286_v63 = vld [vmem:[%s1879_s1 + $0x104] ss:$16 sps:$4 sm:$0xff]  }
  0x16   :  { %v1288_v0 = vld [vmem:[%s1879_s1 + $0x10c] ss:$16 sps:$4 sm:$0xff]   ;;  %v1290_v1 = vld [vmem:[%s1879_s1 + $0x100] ss:$16 sps:$4 sm:$0xff]   ;;  %v1291_v2 = vld [vmem:[%s1879_s1 + $0x108] ss:$16 sps:$4 sm:$0xff]  }
  0x17   :  { %444 = vmatpush1.bf16.msra.mxu0 %v1230_v22  ;;  %487 = vmatpush1.bf16.msra.mxu1 %v1231_v23  ;;  %v21_v3 = vld [vmem:[%s1878_s0] sm:$0xff]  ;;  %v23_v4 = vld [vmem:[%s1878_s0 + $0x10] sm:$0xff] }
  0x18   :  { %445 = vmatprep.subr.bf16.mxu0 %v1232_v24  ;;  %488 = vmatprep.subr.bf16.mxu1 %v1234_v25  ;;  %v1294_v5 = vld [vmem:[%s1881_s3 + $0x74] ss:$8 sps:$4 sm:$0xff]   ;;  %v25_v7 = vpack.c.bf16 %v23_v4, %v21_v3  ;;  %v1292_v8 = vld [vmem:[%s1881_s3 + $0x70] ss:$8 sps:$4 sm:$0xff]   ;;  %v1300_v10 = vld [vmem:[%s1881_s3 + $0x64] ss:$8 sps:$4 sm:$0xff]  }
  0x19   :  { %v1297_v6 = vld [vmem:[%s1881_s3 + $0x174] ss:$8 sps:$4 sm:$0xff]   ;;  %v1295_v9 = vld [vmem:[%s1881_s3 + $0x170] ss:$8 sps:$4 sm:$0xff]   ;;  %v1303_v11 = vld [vmem:[%s1881_s3 + $0x164] ss:$8 sps:$4 sm:$0xff]  }
  0x1a   :  { %v1298_v12 = vld [vmem:[%s1881_s3 + $0x60] ss:$8 sps:$4 sm:$0xff]   ;;  %v1306_v14 = vld [vmem:[%s1881_s3 + $0x54] ss:$8 sps:$4 sm:$0xff]   ;;  %v1304_v16 = vld [vmem:[%s1881_s3 + $0x50] ss:$8 sps:$4 sm:$0xff]  }
  0x1b   :  { %446 = vmatpush1.bf16.msra.mxu0 %v1236_v26  ;;  %489 = vmatpush1.bf16.msra.mxu1 %v1237_v27  ;;  %v1301_v13 = vld [vmem:[%s1881_s3 + $0x160] ss:$8 sps:$4 sm:$0xff]   ;;  %v1309_v15 = vld [vmem:[%s1881_s3 + $0x154] ss:$8 sps:$4 sm:$0xff]   ;;  %v1307_v17 = vld [vmem:[%s1881_s3 + $0x150] ss:$8 sps:$4 sm:$0xff]  }
  0x1c   :  { %447 = vmatprep.subr.bf16.mxu0 %v1238_v28  ;;  %490 = vmatprep.subr.bf16.mxu1 %v1240_v29  ;;  %v1312_v18 = vld [vmem:[%s1881_s3 + $0x44] ss:$8 sps:$4 sm:$0xff]   ;;  %v1310_v20 = vld [vmem:[%s1881_s3 + $0x40] ss:$8 sps:$4 sm:$0xff]  }
  0x1d   :  { %v1315_v19 = vld [vmem:[%s1881_s3 + $0x144] ss:$8 sps:$4 sm:$0xff]   ;;  %v1313_v21 = vld [vmem:[%s1881_s3 + $0x140] ss:$8 sps:$4 sm:$0xff]  }
  0x1f   :  { %448 = vmatpush1.bf16.msra.mxu0 %v1242_v30  ;;  %491 = vmatpush1.bf16.msra.mxu1 %v1243_v31 }
  0x20   :  { %449 = vmatprep.subr.bf16.mxu0 %v1244_v32  ;;  %492 = vmatprep.subr.bf16.mxu1 %v1246_v33 }
  0x23   :  { %450 = vmatpush2.bf16.msra.mxu0 %v1248_v34  ;;  %493 = vmatpush2.bf16.msra.mxu1 %v1249_v35 }
  0x24   :  { %451 = vmatprep.subr.bf16.mxu0 %v1250_v36  ;;  %494 = vmatprep.subr.bf16.mxu1 %v1252_v37 }
  0x27   :  { %452 = vmatpush2.bf16.msra.mxu0 %v1254_v38  ;;  %495 = vmatpush2.bf16.msra.mxu1 %v1255_v39 }
  0x28   :  { %453 = vmatprep.subr.bf16.mxu0 %v1256_v40  ;;  %496 = vmatprep.subr.bf16.mxu1 %v1258_v41 }
  0x2b   :  { %454 = vmatpush2.bf16.msra.mxu0 %v1260_v42  ;;  %497 = vmatpush2.bf16.msra.mxu1 %v1261_v43 }
  0x2c   :  { %455 = vmatprep.subr.bf16.mxu0 %v1262_v44  ;;  %498 = vmatprep.subr.bf16.mxu1 %v1264_v45 }
  0x2f   :  { %456 = vmatpush2.bf16.msra.mxu0 %v1266_v47  ;;  %499 = vmatpush2.bf16.msra.mxu1 %v1267_v48 }
  0x30   :  { %457 = vmatprep.subr.bf16.mxu0 %v1268_v50  ;;  %500 = vmatprep.subr.bf16.mxu1 %v1270_v52 }
  0x33   :  { %458 = vmatpush2.bf16.msra.mxu0 %v1272_v53  ;;  %501 = vmatpush2.bf16.msra.mxu1 %v1273_v54 }
  0x34   :  { %459 = vmatprep.subr.bf16.mxu0 %v1274_v55  ;;  %502 = vmatprep.subr.bf16.mxu1 %v1276_v56 }
  0x37   :  { %460 = vmatpush2.bf16.msra.mxu0 %v1278_v57  ;;  %503 = vmatpush2.bf16.msra.mxu1 %v1279_v58 }
  0x38   :  { %461 = vmatprep.subr.bf16.mxu0 %v1280_v59  ;;  %504 = vmatprep.subr.bf16.mxu1 %v1282_v60 }
  0x3b   :  { %462 = vmatpush2.bf16.msra.mxu0 %v1284_v61  ;;  %505 = vmatpush2.bf16.msra.mxu1 %v1285_v62 }
  0x3c   :  { %463 = vmatprep.subr.bf16.mxu0 %v1286_v63  ;;  %506 = vmatprep.subr.bf16.mxu1 %v1288_v0 }
  0x3f   :  { %464 = vmatpush2.bf16.msra.mxu0 %v1290_v1  ;;  %507 = vmatpush2.bf16.msra.mxu1 %v1291_v2 }
  0x40   :  { %959 = vmatprep.subr.bf16.mxu0 %v1294_v5  ;;  %1002 = vmatprep.subr.bf16.mxu1 %v1297_v6 }
  0x42   :  { %466 = vmatmul.mubr.bf16.vlgmr.msra.gmra.mxu0 %v25_v7  ;;  %509 = vmatmul.mubr.bf16.vlgmr.msra.gmra.mxu1 %v25_v7 }
  0x43   :  { %960 = vmatpush1.bf16.msra.mxu0 %v1292_v8  ;;  %1003 = vmatpush1.bf16.msra.mxu1 %v1295_v9 }
  0x44   :  { %961 = vmatprep.subr.bf16.mxu0 %v1300_v10  ;;  %1004 = vmatprep.subr.bf16.mxu1 %v1303_v11 }
  0x47   :  { %962 = vmatpush1.bf16.msra.mxu0 %v1298_v12  ;;  %1005 = vmatpush1.bf16.msra.mxu1 %v1301_v13 }
  0x48   :  { %963 = vmatprep.subr.bf16.mxu0 %v1306_v14  ;;  %1006 = vmatprep.subr.bf16.mxu1 %v1309_v15 }
  0x4b   :  { %964 = vmatpush1.bf16.msra.mxu0 %v1304_v16  ;;  %1007 = vmatpush1.bf16.msra.mxu1 %v1307_v17 }
  0x4c   :  { %10 = vsyncpa [#allocation3], 0  ;;  %965 = vmatprep.subr.bf16.mxu0 %v1312_v18  ;;  %1008 = vmatprep.subr.bf16.mxu1 %v1315_v19  ;;  %v1318_v22 = vld [vmem:[%s1881_s3 + $0x34] ss:$8 sps:$4 sm:$0xff]   ;;  %v1316_v24 = vld [vmem:[%s1881_s3 + $0x30] ss:$8 sps:$4 sm:$0xff]   ;;  %v93_v6 = vlaneseq }
  0x4d   :  { %v1321_v23 = vld [vmem:[%s1881_s3 + $0x134] ss:$8 sps:$4 sm:$0xff]   ;;  %v1319_v25 = vld [vmem:[%s1881_s3 + $0x130] ss:$8 sps:$4 sm:$0xff]   ;;  %v1324_v26 = vld [vmem:[%s1881_s3 + $0x24] ss:$8 sps:$4 sm:$0xff]  }
  0x4e   :  { %v1327_v27 = vld [vmem:[%s1881_s3 + $0x124] ss:$8 sps:$4 sm:$0xff]   ;;  %v1322_v28 = vld [vmem:[%s1881_s3 + $0x20] ss:$8 sps:$4 sm:$0xff]   ;;  %v1330_v30 = vld [vmem:[%s1881_s3 + $0x14] ss:$8 sps:$4 sm:$0xff]  }
  0x4f   :  { %966 = vmatpush1.bf16.msra.mxu0 %v1310_v20  ;;  %1009 = vmatpush1.bf16.msra.mxu1 %v1313_v21  ;;  %v1325_v29 = vld [vmem:[%s1881_s3 + $0x120] ss:$8 sps:$4 sm:$0xff]   ;;  %v1333_v31 = vld [vmem:[%s1881_s3 + $0x114] ss:$8 sps:$4 sm:$0xff]   ;;  %v1328_v32 = vld [vmem:[%s1881_s3 + $0x10] ss:$8 sps:$4 sm:$0xff]  }
  0x50   :  { %967 = vmatprep.subr.bf16.mxu0 %v1318_v22  ;;  %1010 = vmatprep.subr.bf16.mxu1 %v1321_v23  ;;  %v1331_v33 = vld [vmem:[%s1881_s3 + $0x110] ss:$8 sps:$4 sm:$0xff]   ;;  %v1336_v34 = vld [vmem:[%s1881_s3 + $0x4] ss:$8 sps:$4 sm:$0xff]   ;;  %v1334_v36 = vld [vmem:[%s1881_s3] ss:$8 sps:$4 sm:$0xff]  }
  0x51   :  { %v1339_v35 = vld [vmem:[%s1881_s3 + $0x104] ss:$8 sps:$4 sm:$0xff]   ;;  %v1337_v37 = vld [vmem:[%s1881_s3 + $0x100] ss:$8 sps:$4 sm:$0xff]   ;;  %v1342_v38 = vld [vmem:[%s1881_s3 + $0xf4] ss:$8 sps:$4 sm:$0xff]  }
  0x52   :  { %v1345_v39 = vld [vmem:[%s1881_s3 + $0x1f4] ss:$8 sps:$4 sm:$0xff]   ;;  %v1340_v40 = vld [vmem:[%s1881_s3 + $0xf0] ss:$8 sps:$4 sm:$0xff]   ;;  %v1348_v42 = vld [vmem:[%s1881_s3 + $0xe4] ss:$8 sps:$4 sm:$0xff]  }
  0x53   :  { %968 = vmatpush1.bf16.msra.mxu0 %v1316_v24  ;;  %1011 = vmatpush1.bf16.msra.mxu1 %v1319_v25  ;;  %v1343_v41 = vld [vmem:[%s1881_s3 + $0x1f0] ss:$8 sps:$4 sm:$0xff]   ;;  %v1351_v43 = vld [vmem:[%s1881_s3 + $0x1e4] ss:$8 sps:$4 sm:$0xff]   ;;  %v1346_v44 = vld [vmem:[%s1881_s3 + $0xe0] ss:$8 sps:$4 sm:$0xff]  }
  0x54   :  { %969 = vmatprep.subr.bf16.mxu0 %v1324_v26  ;;  %1012 = vmatprep.subr.bf16.mxu1 %v1327_v27  ;;  %v1349_v45 = vld [vmem:[%s1881_s3 + $0x1e0] ss:$8 sps:$4 sm:$0xff]   ;;  %v1354_v46 = vld [vmem:[%s1881_s3 + $0xd4] ss:$8 sps:$4 sm:$0xff]   ;;  %v1352_v48 = vld [vmem:[%s1881_s3 + $0xd0] ss:$8 sps:$4 sm:$0xff]  }
  0x55   :  { %v1357_v47 = vld [vmem:[%s1881_s3 + $0x1d4] ss:$8 sps:$4 sm:$0xff]   ;;  %v1355_v49 = vld [vmem:[%s1881_s3 + $0x1d0] ss:$8 sps:$4 sm:$0xff]   ;;  %v1360_v50 = vld [vmem:[%s1881_s3 + $0xc4] ss:$8 sps:$4 sm:$0xff]  }
  0x56   :  { %v1363_v51 = vld [vmem:[%s1881_s3 + $0x1c4] ss:$8 sps:$4 sm:$0xff]   ;;  %v1358_v52 = vld [vmem:[%s1881_s3 + $0xc0] ss:$8 sps:$4 sm:$0xff]   ;;  %v1366_v54 = vld [vmem:[%s1881_s3 + $0xb4] ss:$8 sps:$4 sm:$0xff]  }
  0x57   :  { %970 = vmatpush1.bf16.msra.mxu0 %v1322_v28  ;;  %1013 = vmatpush1.bf16.msra.mxu1 %v1325_v29  ;;  %v1361_v53 = vld [vmem:[%s1881_s3 + $0x1c0] ss:$8 sps:$4 sm:$0xff]   ;;  %v1369_v55 = vld [vmem:[%s1881_s3 + $0x1b4] ss:$8 sps:$4 sm:$0xff]   ;;  %v1364_v56 = vld [vmem:[%s1881_s3 + $0xb0] ss:$8 sps:$4 sm:$0xff]  }
  0x58   :  { %971 = vmatprep.subr.bf16.mxu0 %v1330_v30  ;;  %1014 = vmatprep.subr.bf16.mxu1 %v1333_v31  ;;  %v1367_v57 = vld [vmem:[%s1881_s3 + $0x1b0] ss:$8 sps:$4 sm:$0xff]   ;;  %v1372_v58 = vld [vmem:[%s1881_s3 + $0xa4] ss:$8 sps:$4 sm:$0xff]   ;;  %v1370_v60 = vld [vmem:[%s1881_s3 + $0xa0] ss:$8 sps:$4 sm:$0xff]  }
  0x59   :  { %v1375_v59 = vld [vmem:[%s1881_s3 + $0x1a4] ss:$8 sps:$4 sm:$0xff]   ;;  %v1373_v61 = vld [vmem:[%s1881_s3 + $0x1a0] ss:$8 sps:$4 sm:$0xff]   ;;  %v1378_v62 = vld [vmem:[%s1881_s3 + $0x94] ss:$8 sps:$4 sm:$0xff]  }
  0x5a   :  { %v1381_v63 = vld [vmem:[%s1881_s3 + $0x194] ss:$8 sps:$4 sm:$0xff]   ;;  %v1376_v0 = vld [vmem:[%s1881_s3 + $0x90] ss:$8 sps:$4 sm:$0xff]   ;;  %v1384_v2 = vld [vmem:[%s1881_s3 + $0x84] ss:$8 sps:$4 sm:$0xff]  }
  0x5b   :  { %972 = vmatpush1.bf16.msra.mxu0 %v1328_v32  ;;  %1015 = vmatpush1.bf16.msra.mxu1 %v1331_v33  ;;  %v1379_v1 = vld [vmem:[%s1881_s3 + $0x190] ss:$8 sps:$4 sm:$0xff]   ;;  %v1387_v3 = vld [vmem:[%s1881_s3 + $0x184] ss:$8 sps:$4 sm:$0xff]   ;;  %v1382_v4 = vld [vmem:[%s1881_s3 + $0x80] ss:$8 sps:$4 sm:$0xff]  }
  0x5c   :  { %973 = vmatprep.subr.bf16.mxu0 %v1336_v34  ;;  %1016 = vmatprep.subr.bf16.mxu1 %v1339_v35  ;;  %v1385_v5 = vld [vmem:[%s1881_s3 + $0x180] ss:$8 sps:$4 sm:$0xff]   ;;  %v1855_v7 = vshrl.u32 %v93_v6, 7 }
  0x5d   :  { %v91_v10 = vld [vmem:[%s1880_s2] sm:$0xf] }
  0x5e   :  { %v95_v8 = vsub.s32 0, %v1855_v7  ;;  %v103_v9 = vsub.s32 2, %v1855_v7  ;;  %v99_v11 = vsub.s32 1, %v1855_v7  ;;  %v107_v12 = vsub.s32 3, %v1855_v7 }
  0x5f   :  { %974 = vmatpush1.bf16.msra.mxu0 %v1334_v36  ;;  %1017 = vmatpush1.bf16.msra.mxu1 %v1337_v37 }
  0x60   :  { %975 = vmatprep.subr.bf16.mxu0 %v1342_v38  ;;  %1018 = vmatprep.subr.bf16.mxu1 %v1345_v39  ;;  %v96_v13 = vrot.slane %v91_v10, %v95_v8  ;;  %v104_v14 = vrot.slane %v91_v10, %v103_v9  ;;  %v100_v17 = vrot.slane %v91_v10, %v99_v11 }
  0x61   :  { %v108_v18 = vrot.slane %v91_v10, %v107_v12 }
  0x63   :  { %976 = vmatpush2.bf16.msra.mxu0 %v1340_v40  ;;  %1019 = vmatpush2.bf16.msra.mxu1 %v1343_v41 }
  0x64   :  { %977 = vmatprep.subr.bf16.mxu0 %v1348_v42  ;;  %1020 = vmatprep.subr.bf16.mxu1 %v1351_v43 }
  0x67   :  { %978 = vmatpush2.bf16.msra.mxu0 %v1346_v44  ;;  %1021 = vmatpush2.bf16.msra.mxu1 %v1349_v45 }
  0x68   :  { %979 = vmatprep.subr.bf16.mxu0 %v1354_v46  ;;  %1022 = vmatprep.subr.bf16.mxu1 %v1357_v47 }
  0x6b   :  { %980 = vmatpush2.bf16.msra.mxu0 %v1352_v48  ;;  %1023 = vmatpush2.bf16.msra.mxu1 %v1355_v49 }
  0x6c   :  { %981 = vmatprep.subr.bf16.mxu0 %v1360_v50  ;;  %1024 = vmatprep.subr.bf16.mxu1 %v1363_v51 }
  0x6f   :  { %982 = vmatpush2.bf16.msra.mxu0 %v1358_v52  ;;  %1025 = vmatpush2.bf16.msra.mxu1 %v1361_v53 }
  0x70   :  { %983 = vmatprep.subr.bf16.mxu0 %v1366_v54  ;;  %1026 = vmatprep.subr.bf16.mxu1 %v1369_v55 }
  0x73   :  { %984 = vmatpush2.bf16.msra.mxu0 %v1364_v56  ;;  %1027 = vmatpush2.bf16.msra.mxu1 %v1367_v57 }
  0x74   :  { %985 = vmatprep.subr.bf16.mxu0 %v1372_v58  ;;  %1028 = vmatprep.subr.bf16.mxu1 %v1375_v59 }
  0x77   :  { %986 = vmatpush2.bf16.msra.mxu0 %v1370_v60  ;;  %1029 = vmatpush2.bf16.msra.mxu1 %v1373_v61 }
  0x78   :  { %987 = vmatprep.subr.bf16.mxu0 %v1378_v62  ;;  %1030 = vmatprep.subr.bf16.mxu1 %v1381_v63 }
  0x7b   :  { %988 = vmatpush2.bf16.msra.mxu0 %v1376_v0  ;;  %1031 = vmatpush2.bf16.msra.mxu1 %v1379_v1 }
  0x7c   :  { %989 = vmatprep.subr.bf16.mxu0 %v1384_v2  ;;  %1032 = vmatprep.subr.bf16.mxu1 %v1387_v3 }
  0x7f   :  { %990 = vmatpush2.bf16.msra.mxu0 %v1382_v4  ;;  %1033 = vmatpush2.bf16.msra.mxu1 %v1385_v5 }
 0x102   :  { %v467_v15 = vpop.f32.mrf.mxu0  ;;  %v510_v16 = vpop.f32.mrf.mxu1 }
 0x103   :  { %v468_v19 = vadd.f32 %v467_v15, %v96_v13  ;;  %v511_v20 = vadd.f32 %v510_v16, %v104_v14  ;;  %v627_v16 = vld [vmem:[%s1882_s4] sm:$0x3]  ;;  %s1426_s4 = smov [#allocation2]  }
 0x104   :  { %v469_v21 = vpop.f32.mrf.mxu0  ;;  %v512_v22 = vpop.f32.mrf.mxu1  ;;  %s1054_s24 = sshll.u32 %s1426_s4, 4  ;;  %s1055_s24 = int_to_ptr.vmem [resolvable:$true] %s1054_s24 }
 0x105   :  { %v527_v23 = vmul.f32 0.70710677, %v468_v19  ;;  %v529_v24 = vmul.f32 0.70710677, %v511_v20  ;;  %v470_v25 = vadd.f32 %v469_v21, %v100_v17  ;;  %v513_v26 = vadd.f32 %v512_v22, %v108_v18  ;;  %s1404_s25 = scalar_lea.vmem %s1055_s24, 512  ;;  %p1409_p1 = scmp.lt.s32.totalorder %s1055_s24, %s1055_s24 }
 0x106   :  { %v471_v27 = vpop.f32.mrf.mxu0  ;;  %v514_v28 = vpop.f32.mrf.mxu1  ;;  %v519_v47 = vmul.f32 0.5, %v468_v19  ;;  %v521_v1 = vmul.f32 0.5, %v511_v20  ;;  %p1405_p0 = scmp.ne.s32.totalorder %s1055_s24, %s1404_s25  ;;  %p1410_p2 = scmp.lt.s32.totalorder %s1404_s25, %s1404_s25 }
 0x107   :  { %v472_v29 = vadd.f32 %v471_v27, %v96_v13  ;;  %v515_v30 = vadd.f32 %v514_v28, %v104_v14  ;;  %1388 = verf.f32 %v527_v23  ;;  %v528_v31 = vmul.f32 0.70710677, %v470_v25 }
 0x108   :  { %v473_v32 = vpop.f32.mrf.mxu0  ;;  %v516_v33 = vpop.f32.mrf.mxu1  ;;  %1390 = verf.f32 %v529_v24  ;;  %v530_v34 = vmul.f32 0.70710677, %v513_v26  ;;  %v520_v48 = vmul.f32 0.5, %v470_v25  ;;  %v522_v61 = vmul.f32 0.5, %v513_v26  ;;  %p1411_p3 = por %p1410_p2, %p1409_p1 }
 0x109   :  { %v531_v35 = vmul.f32 0.70710677, %v472_v29  ;;  %1392 = verf.f32 %v528_v31  ;;  %v533_v36 = vmul.f32 0.70710677, %v515_v30  ;;  %v474_v37 = vadd.f32 %v473_v32, %v100_v17 }
 0x10a   :  { %v517_v38 = vadd.f32 %v516_v33, %v108_v18  ;;  %1394 = verf.f32 %v530_v34  ;;  %v523_v54 = vmul.f32 0.5, %v472_v29  ;;  %v525_v58 = vmul.f32 0.5, %v515_v30  ;;  %p1412_p4 = pnand %p1411_p3, %p1405_p0 }
 0x10b   :  { %1396 = verf.f32 %v531_v35  ;;  %v532_v39 = vmul.f32 0.70710677, %v474_v37  ;;  %v524_v59 = vmul.f32 0.5, %v474_v37  ;;  %v632_v17 = vrot.slane %v627_v16, %v95_v8 }
 0x10c   :  { %1398 = verf.f32 %v533_v36  ;;  %v534_v40 = vmul.f32 0.70710677, %v517_v38  ;;  %v526_v63 = vmul.f32 0.5, %v517_v38  ;;  %v636_v18 = vrot.slane %v627_v16, %v99_v11 }
 0x10d   :  { %1400 = verf.f32 %v532_v39 }
 0x10e   :  { %1402 = verf.f32 %v534_v40 }
 0x114   :  { %v1389_v41 = vpop.eup %1388 }
 0x115   :  { %v1391_v42 = vpop.eup %1390  ;;  %v543_v52 = vadd.f32 1.0, %v1389_v41 }
 0x116   :  { %v1393_v43 = vpop.eup %1392  ;;  %v545_v57 = vadd.f32 1.0, %v1391_v42 }
 0x117   :  { %v1395_v44 = vpop.eup %1394  ;;  %v544_v49 = vadd.f32 1.0, %v1393_v43  ;;  %v551_v5 = vmul.f32 %v543_v52, %v519_v47 }
 0x118   :  { %v1397_v45 = vpop.eup %1396  ;;  %v546_v53 = vadd.f32 1.0, %v1395_v44  ;;  %v553_v10 = vmul.f32 %v545_v57, %v521_v1 }
 0x119   :  { %v1399_v46 = vpop.eup %1398  ;;  %v547_v50 = vadd.f32 1.0, %v1397_v45  ;;  %v552_v2 = vmul.f32 %v544_v49, %v520_v48 }
 0x11a   :  { %v1401_v51 = vpop.eup %1400  ;;  %v549_v55 = vadd.f32 1.0, %v1399_v46  ;;  %v554_v6 = vmul.f32 %v546_v53, %v522_v61 }
 0x11b   :  { %v1403_v56 = vpop.eup %1402  ;;  %v548_v60 = vadd.f32 1.0, %v1401_v51  ;;  %v555_v62 = vmul.f32 %v547_v50, %v523_v54 }
 0x11c   :  { %v550_v0 = vadd.f32 1.0, %v1403_v56  ;;  %v557_v3 = vmul.f32 %v549_v55, %v525_v58 }
 0x11d   :  { %v556_v4 = vmul.f32 %v548_v60, %v524_v59  ;;  %v559_v13 = vpack.c.bf16 %v555_v62, %v551_v5 }
 0x11e   :  { %v558_v9 = vmul.f32 %v550_v0, %v526_v63  ;;  %v561_v15 = vpack.c.bf16 %v557_v3, %v553_v10 }
 0x11f   :  { %v560_v12 = vpack.c.bf16 %v556_v4, %v552_v2 }
 0x120   :  { %v562_v14 = vpack.c.bf16 %v558_v9, %v554_v6 }
 0x121   :  { %991 = vmatprep.mubr.bf16.mxu0 %v560_v12 }
 0x122   :  { %1034 = vmatprep.mubr.bf16.mxu1 %v562_v14  ;;  %992 = vmatmul.mubr.bf16.vlgmr.msra.gmra.mxu0 %v559_v13 }
 0x123   :  { %1035 = vmatmul.mubr.bf16.vlgmr.msra.gmra.mxu1 %v561_v15 }
 0x1e2   :  { %v993_v19 = vpop.f32.mrf.mxu0 }
 0x1e3   :  { %v994_v20 = vadd.f32 %v993_v19, %v632_v17  ;;  %v1036_v21 = vpop.f32.mrf.mxu1 }
 0x1e4   :  { %v995_v22 = vpop.f32.mrf.mxu0 }
 0x1e5   :  { %v1037_v23 = vadd.f32 %v1036_v21, %v994_v20  ;;  %v996_v24 = vadd.f32 %v995_v22, %v636_v18  ;;  %v1038_v25 = vpop.f32.mrf.mxu1 }
 0x1e6   :  { %v997_v26 = vpop.f32.mrf.mxu0 }
 0x1e7   :  { %1045 = vst [vmem:[#allocation2] sm:$0xff] %v1037_v23  ;;  %v1039_v27 = vadd.f32 %v1038_v25, %v996_v24  ;;  %v998_v28 = vadd.f32 %v997_v26, %v632_v17  ;;  %v1040_v29 = vpop.f32.mrf.mxu1 }
 0x1e8   :  { %v999_v30 = vpop.f32.mrf.mxu0 }
 0x1e9   :  { %1046 = vst [vmem:[#allocation2 + $0x8] sm:$0xff] %v1039_v27  ;;  %v1041_v8 = vadd.f32 %v1040_v29, %v998_v28  ;;  %v1000_v31 = vadd.f32 %v999_v30, %v636_v18  ;;  %v1042_v7 = vpop.f32.mrf.mxu1 }
 0x1eb   :  { %1047 = vst [vmem:[#allocation2 + $0x10] sm:$0xff] %v1041_v8  ;;  %v1043_v11 = vadd.f32 %v1042_v7, %v1000_v31 }
 0x1ed   :  { %1048 = vst [vmem:[#allocation2 + $0x18] sm:$0xff] %v1043_v11 }
 0x1ee   :  { %1415 = shalt.err (!%p1412_p4)
}
 0x1ef   :  { %s1427_s26 = smov 256   ;;  %s1428_s27 = smov 16  }
 0x1f0   :  { %1060 = dma.vmem_to_hbm [thread:$0]  %s1055_s24, 512, %s1883_s5, [#allocation3], %s1427_s26, %s1427_s26, %s1428_s27  }
 0x1f1   :  { %1424 = dma.done.wait [#allocation3], 512  }
 0x1f2   :  { %1425 = vsyncadd [#allocation3], 4294966784 }
 0x1f3   :  { %1064 = vsyncpa [#allocation3], 1 }

</bundles_post_ra>
